<compile_context>
chip_gen: v6e
topology: v6e:2x2x1
jax: 0.10.0
libtpu: 0.0.40
codegen_flags: <defaults>
</compile_context>

<pallas_src>
import functools

import jax
import jax.numpy as jnp
from jax.experimental import pallas as pl
from jax.experimental.pallas import tpu as pltpu


def _round_up(x, m):
    return ((x + m - 1) // m) * m


def _choose_tile_n(n, max_tile):
    """Rows per grid step: big tiles (>=512 needed to approach HBM roofline),
    but keep an even number of tiles when N is large so the "parallel" grid
    axis shards across both TensorCores on v7x."""
    if n <= max_tile:
        return _round_up(n, 8)
    n_tiles = -(-n // max_tile)
    if n_tiles % 2:
        n_tiles += 1
    return _round_up(-(-n // n_tiles), 8)


def _bigram_loss_kernel(v_real, idx_ref, tgt_ref, table_ref,
                        logits_ref, partials_ref):
    """Per-tile: one-hot MXU gather of table rows + CE partials (num, cnt)."""
    tile_n, v_pad = logits_ref.shape
    v_row_pad = table_ref.shape[0]

    idx = idx_ref[...]                                  # (tile_n, 1) int32
    tgt = tgt_ref[...]                                  # (tile_n, 1) int32

    # --- Row gather as a one-hot MXU matmul: (tile_n, Vr) @ (Vr, 128). ---
    # One-hot entries (0/1) are exact in bf16; HIGHEST precision keeps the
    # f32 table values exact through the multi-pass matmul.
    row_iota = jax.lax.broadcasted_iota(jnp.int32, (tile_n, v_row_pad), 1)
    idx_safe = jnp.clip(idx, 0, v_real - 1)   # no VMEM bounds check -> clamp
    onehot = (row_iota == idx_safe).astype(jnp.float32)
    logits = jnp.dot(onehot, table_ref[...],
                     preferred_element_type=jnp.float32,
                     precision=jax.lax.Precision.HIGHEST)
    logits_ref[...] = logits

    # --- Cross entropy with ignore_index=-1, vectorized over the tile. ---
    lane = jax.lax.broadcasted_iota(jnp.int32, (tile_n, v_pad), 1)
    valid_f = (tgt >= 0).astype(jnp.float32)  # padded rows carry tgt=-1 -> 0
    tgt_safe = jnp.maximum(tgt, 0)
    masked = jnp.where(lane < v_real, logits, -1e30)    # kill padded lanes
    m = jnp.max(masked, axis=-1, keepdims=True)
    lse = jnp.log(jnp.sum(jnp.exp(masked - m), axis=-1, keepdims=True)) + m
    picked = jnp.sum(jnp.where(lane == tgt_safe, logits, 0.0),
                     axis=-1, keepdims=True)
    num = jnp.sum(valid_f * (lse - picked))             # tile numerator
    cnt = jnp.sum(valid_f)                              # tile valid count

    # Lane-dense partials block: lane 0 = numerator, lane 1 = count.
    out_lane = jax.lax.broadcasted_iota(jnp.int32, (1, 1, 128), 2)
    partials_ref[...] = jnp.where(
        out_lane == 0, num,
        jnp.where(out_lane == 1, cnt, 0.0)).astype(jnp.float32)


def _bigram_logits_kernel(v_real, idx_ref, table_ref, logits_ref):
    """targets=None variant: pure one-hot MXU gather, no CE work."""
    tile_n, _ = logits_ref.shape
    v_row_pad = table_ref.shape[0]
    row_iota = jax.lax.broadcasted_iota(jnp.int32, (tile_n, v_row_pad), 1)
    idx_safe = jnp.clip(idx_ref[...], 0, v_real - 1)
    onehot = (row_iota == idx_safe).astype(jnp.float32)
    logits_ref[...] = jnp.dot(onehot, table_ref[...],
                              preferred_element_type=jnp.float32,
                              precision=jax.lax.Precision.HIGHEST)


def bigram_forward(idx, logits_table, targets=None, *, max_tile_n=2048):
    """Pallas equivalent of Bigram.forward(idx, targets)."""
    B, T = idx.shape
    V = logits_table.shape[0]
    N = B * T

    v_pad = _round_up(max(V, 128), 128)      # lane-dense logits last dim
    v_row_pad = _round_up(V, 8)              # sublane-aligned contraction dim
    tile_n = _choose_tile_n(N, max_tile_n)   # rows per grid step
    n_pad = _round_up(N, tile_n)
    grid = n_pad // tile_n

    table_p = jnp.zeros((v_row_pad, v_pad), jnp.float32)
    table_p = table_p.at[:V, :V].set(logits_table.astype(jnp.float32))
    idx_col = jnp.zeros((n_pad, 1), jnp.int32).at[:N, 0].set(
        idx.reshape(-1).astype(jnp.int32))

    table_bytes = 4 * v_row_pad * v_pad
    logits_bytes = 4 * n_pad * v_pad
    gather_flops = 2 * n_pad * v_row_pad * v_pad

    table_spec = pl.BlockSpec((v_row_pad, v_pad), lambda i: (0, 0))
    col_spec = pl.BlockSpec((tile_n, 1), lambda i: (i, 0))
    logits_spec = pl.BlockSpec((tile_n, v_pad), lambda i: (i, 0))

    if targets is None:
        kernel = functools.partial(_bigram_logits_kernel, V)
        logits_flat = pl.pallas_call(
            kernel,
            out_shape=jax.ShapeDtypeStruct((n_pad, v_pad), jnp.float32),
            grid_spec=pltpu.PrefetchScalarGridSpec(
                num_scalar_prefetch=0,
                grid=(grid,),
                in_specs=[col_spec, table_spec],
                out_specs=logits_spec),
            compiler_params=pltpu.CompilerParams(
                dimension_semantics=("parallel",)),
            cost_estimate=pl.CostEstimate(
                flops=gather_flops, transcendentals=0,
                bytes_accessed=logits_bytes + table_bytes + 4 * n_pad),
        )(idx_col, table_p)
        logits = logits_flat[:N, :V].reshape(B, T, V)
        return logits, None

    tgt_col = jnp.full((n_pad, 1), -1, jnp.int32).at[:N, 0].set(
        targets.reshape(-1).astype(jnp.int32))

    kernel = functools.partial(_bigram_loss_kernel, V)
    logits_flat, partials = pl.pallas_call(
        kernel,
        out_shape=(
            jax.ShapeDtypeStruct((n_pad, v_pad), jnp.float32),
            jax.ShapeDtypeStruct((grid, 1, 128), jnp.float32),
        ),
        grid_spec=pltpu.PrefetchScalarGridSpec(
            num_scalar_prefetch=0,
            grid=(grid,),
            in_specs=[col_spec, col_spec, table_spec],
            out_specs=(
                logits_spec,
                pl.BlockSpec((1, 1, 128), lambda i: (i, 0, 0)),
            )),
        compiler_params=pltpu.CompilerParams(
            dimension_semantics=("parallel",)),
        cost_estimate=pl.CostEstimate(
            flops=gather_flops + 8 * n_pad * v_pad,
            transcendentals=n_pad * (v_pad + 1),
            bytes_accessed=logits_bytes + table_bytes + 8 * n_pad
                           + 4 * grid * 128),
    )(idx_col, tgt_col, table_p)

    logits = logits_flat[:N, :V].reshape(B, T, V)
    num = jnp.sum(partials[:, 0, 0])
    cnt = jnp.sum(partials[:, 0, 1])
    # NOTE: diverges from F.cross_entropy only when *every* target is
    # ignore_index (PyTorch yields NaN via 0/0; we return 0.0).
    loss = num / jnp.maximum(cnt, 1.0)
    return logits, loss


def ref_forward(idx, logits_table, targets):
    """Pure-JAX reference mirroring the PyTorch module."""
    logits = logits_table[idx]                              # (B, T, V)
    V = logits_table.shape[0]
    logp = jax.nn.log_softmax(logits.reshape(-1, V), axis=-1)
    t = targets.reshape(-1)
    valid = t != -1
    t_safe = jnp.where(valid, t, 0)
    nll = -jnp.take_along_axis(logp, t_safe[:, None], axis=-1)[:, 0]
    loss = (jnp.sum(nll * valid.astype(jnp.float32))
            / jnp.sum(valid.astype(jnp.float32)))
    return logits, loss


if __name__ == "__main__":
    vocab_size = 27   # makemore char vocab (26 letters + '.')
    B, T = 2, 8

    key = jax.random.PRNGKey(0)
    k_tbl, k_idx, k_tgt = jax.random.split(key, 3)

    # Module initializes the table to zeros; use small normal so the loss is
    # non-trivial while keeping the same (V, V) shape.
    logits_table = 0.1 * jax.random.normal(
        k_tbl, (vocab_size, vocab_size), jnp.float32)

    idx = jax.random.randint(k_idx, (B, T), 0, vocab_size, dtype=jnp.int32)
    targets = jax.random.randint(k_tgt, (B, T), 0, vocab_size, dtype=jnp.int32)
    # Exercise ignore_index=-1 on a couple of positions.
    targets = targets.at[0, 0].set(-1).at[1, T - 1].set(-1)

    logits, loss = bigram_forward(idx, logits_table, targets)
    jax.block_until_ready((logits, loss))

    logits_ref, loss_ref = ref_forward(idx, logits_table, targets)
    assert logits.shape == (B, T, vocab_size)
    assert jnp.allclose(logits, logits_ref, atol=1e-5, rtol=1e-5)
    assert jnp.allclose(loss, loss_ref, atol=1e-5, rtol=1e-5)

    # targets=None path: loss is None, logits identical, CE kernel not run.
    logits_nl, loss_nl = bigram_forward(idx, logits_table, None)
    jax.block_until_ready(logits_nl)
    assert loss_nl is None
    assert jnp.allclose(logits_nl, logits_ref, atol=1e-5, rtol=1e-5)

    # Multi-tile path (grid=2, padded tail rows) with a tiny tile cap: same
    # numerics, exercises the "parallel" grid axis / per-tile partials.
    logits_mt, loss_mt = bigram_forward(idx, logits_table, targets,
                                        max_tile_n=8)
    jax.block_until_ready((logits_mt, loss_mt))
    assert jnp.allclose(logits_mt, logits_ref, atol=1e-5, rtol=1e-5)
    assert jnp.allclose(loss_mt, loss_ref, atol=1e-5, rtol=1e-5)

    print("KERNEL_OK")
</pallas_src>

<mosaic_0001>
module attributes {stable_mosaic.version = 11 : i64} {
  func.func @_bigram_loss_kernel(%arg0: i32, %arg1: memref<16x1xi32, #tpu.memory_space<vmem>>, %arg2: memref<16x1xi32, #tpu.memory_space<vmem>>, %arg3: memref<32x128xf32, #tpu.memory_space<vmem>>, %arg4: memref<16x128xf32, #tpu.memory_space<vmem>>, %arg5: memref<1x1x128xf32, #tpu.memory_space<vmem>>) attributes {dimension_semantics = [#tpu.dimension_semantics<parallel>], iteration_bounds = array<i64: 1>, scalar_prefetch = 0 : i64, scratch_operands = 0 : i64, tpu.core_type = #tpu.core_type<tc>, window_params = [{transform_indices = @transform_0, window_bounds = array<i64: 16, 1>}, {transform_indices = @transform_1, window_bounds = array<i64: 16, 1>}, {pipeline_mode = #tpu.pipeline_mode<synchronous>, transform_indices = @transform_2, window_bounds = array<i64: 32, 128>}, {transform_indices = @transform_3, window_bounds = array<i64: 16, 128>}, {transform_indices = @transform_4, window_bounds = array<i64: 1, 1, 128>}]} {
    %c0 = arith.constant 0 : index
    %c0_0 = arith.constant 0 : index
    %0 = vector.load %arg1[%c0, %c0_0] : memref<16x1xi32, #tpu.memory_space<vmem>>, vector<16x1xi32>
    %c0_1 = arith.constant 0 : index
    %c0_2 = arith.constant 0 : index
    %1 = vector.load %arg2[%c0_1, %c0_2] : memref<16x1xi32, #tpu.memory_space<vmem>>, vector<16x1xi32>
    %2 = tpu.iota {dimensions = array<i32: 1>} : vector<16x32xi32>
    %c0_i32 = arith.constant 0 : i32
    %c26_i32 = arith.constant 26 : i32
    %3 = vector.broadcast %c0_i32 : i32 to vector<16x1xi32>
    %4 = arith.maxsi %3, %0 : vector<16x1xi32>
    %5 = vector.broadcast %c26_i32 : i32 to vector<16x1xi32>
    %6 = arith.minsi %5, %4 : vector<16x1xi32>
    %7 = vector.broadcast %6 : vector<16x1xi32> to vector<16x32xi32>
    %8 = arith.cmpi eq, %2, %7 : vector<16x32xi32>
    %9 = arith.extui %8 : vector<16x32xi1> to vector<16x32xi32>
    %10 = arith.sitofp %9 : vector<16x32xi32> to vector<16x32xf32>
    %c0_3 = arith.constant 0 : index
    %c0_4 = arith.constant 0 : index
    %11 = vector.load %arg3[%c0_3, %c0_4] : memref<32x128xf32, #tpu.memory_space<vmem>>, vector<32x128xf32>
    %cst = arith.constant dense<0.000000e+00> : vector<16x128xf32>
    %12 = tpu.matmul %10, %11, %cst {dimension_numbers = #tpu.dot_dimension_numbers<[1], [0], [0], [1], [0, 0, 1, 1], [], []>, precision = #tpu.contract_precision<fp32>} : vector<16x32xf32>, vector<32x128xf32>, vector<16x128xf32> -> vector<16x128xf32>
    %c0_5 = arith.constant 0 : index
    %c0_6 = arith.constant 0 : index
    %13 = vector.load %arg4[%c0_5, %c0_6] : memref<16x128xf32, #tpu.memory_space<vmem>>, vector<16x128xf32>
    tpu.vector_store %arg4[%c0_5, %c0_6], %12 {strides = array<i32>} : memref<16x128xf32, #tpu.memory_space<vmem>>, vector<16x128xf32>,
    %14 = tpu.iota {dimensions = array<i32: 1>} : vector<16x128xi32>
    %c0_i32_7 = arith.constant 0 : i32
    %15 = vector.broadcast %c0_i32_7 : i32 to vector<16x1xi32>
    %16 = arith.cmpi sge, %1, %15 : vector<16x1xi32>
    %17 = arith.extui %16 : vector<16x1xi1> to vector<16x1xi32>
    %18 = arith.sitofp %17 : vector<16x1xi32> to vector<16x1xf32>
    %c0_i32_8 = arith.constant 0 : i32
    %19 = vector.broadcast %c0_i32_8 : i32 to vector<16x1xi32>
    %20 = arith.maxsi %1, %19 : vector<16x1xi32>
    %c27_i32 = arith.constant 27 : i32
    %21 = vector.broadcast %c27_i32 : i32 to vector<16x128xi32>
    %22 = arith.cmpi slt, %14, %21 : vector<16x128xi32>
    %cst_9 = arith.constant -1.000000e+30 : f32
    %23 = vector.broadcast %cst_9 : f32 to vector<16x128xf32>
    %24 = arith.select %22, %12, %23 : vector<16x128xi1>, vector<16x128xf32>
    %cst_10 = arith.constant dense<0xFF800000> : vector<16xf32>
    %25 = vector.multi_reduction <maximumf>, %24, %cst_10 [1] : vector<16x128xf32> to vector<16xf32>
    %26 = vector.shape_cast %25 : vector<16xf32> to vector<16x1xf32>
    %27 = vector.broadcast %26 : vector<16x1xf32> to vector<16x128xf32>
    %28 = arith.subf %24, %27 : vector<16x128xf32>
    %29 = math.exp %28 : vector<16x128xf32>
    %cst_11 = arith.constant dense<0.000000e+00> : vector<16xf32>
    %30 = vector.multi_reduction <add>, %29, %cst_11 [1] : vector<16x128xf32> to vector<16xf32>
    %31 = vector.shape_cast %30 : vector<16xf32> to vector<16x1xf32>
    %32 = math.log %31 : vector<16x1xf32>
    %33 = arith.addf %32, %26 : vector<16x1xf32>
    %34 = vector.broadcast %20 : vector<16x1xi32> to vector<16x128xi32>
    %35 = arith.cmpi eq, %14, %34 : vector<16x128xi32>
    %cst_12 = arith.constant 0.000000e+00 : f32
    %36 = vector.broadcast %cst_12 : f32 to vector<16x128xf32>
    %37 = arith.select %35, %12, %36 : vector<16x128xi1>, vector<16x128xf32>
    %cst_13 = arith.constant dense<0.000000e+00> : vector<16xf32>
    %38 = vector.multi_reduction <add>, %37, %cst_13 [1] : vector<16x128xf32> to vector<16xf32>
    %39 = vector.shape_cast %38 : vector<16xf32> to vector<16x1xf32>
    %40 = arith.subf %33, %39 : vector<16x1xf32>
    %41 = arith.mulf %18, %40 : vector<16x1xf32>
    %42 = vector.shape_cast %41 : vector<16x1xf32> to vector<1x16x1xf32>
    %cst_14 = arith.constant dense<0.000000e+00> : vector<1xf32>
    %43 = vector.multi_reduction <add>, %42, %cst_14 [1, 2] : vector<1x16x1xf32> to vector<1xf32>
    %44 = vector.shape_cast %43 : vector<1xf32> to vector<1x1x1xf32>
    %45 = vector.extract %44[0, 0, 0] : f32 from vector<1x1x1xf32>
    %46 = vector.shape_cast %18 : vector<16x1xf32> to vector<1x16x1xf32>
    %cst_15 = arith.constant dense<0.000000e+00> : vector<1xf32>
    %47 = vector.multi_reduction <add>, %46, %cst_15 [1, 2] : vector<1x16x1xf32> to vector<1xf32>
    %48 = vector.shape_cast %47 : vector<1xf32> to vector<1x1x1xf32>
    %49 = vector.extract %48[0, 0, 0] : f32 from vector<1x1x1xf32>
    %50 = tpu.iota {dimensions = array<i32: 2>} : vector<1x1x128xi32>
    %c0_i32_16 = arith.constant 0 : i32
    %51 = vector.broadcast %c0_i32_16 : i32 to vector<1x1x128xi32>
    %52 = arith.cmpi eq, %50, %51 : vector<1x1x128xi32>
    %c1_i32 = arith.constant 1 : i32
    %53 = vector.broadcast %c1_i32 : i32 to vector<1x1x128xi32>
    %54 = arith.cmpi eq, %50, %53 : vector<1x1x128xi32>
    %cst_17 = arith.constant 0.000000e+00 : f32
    %55 = vector.broadcast %49 : f32 to vector<1x1x128xf32>
    %56 = vector.broadcast %cst_17 : f32 to vector<1x1x128xf32>
    %57 = arith.select %54, %55, %56 : vector<1x1x128xi1>, vector<1x1x128xf32>
    %58 = vector.broadcast %45 : f32 to vector<1x1x128xf32>
    %59 = arith.select %52, %58, %57 : vector<1x1x128xi1>, vector<1x1x128xf32>
    %c0_18 = arith.constant 0 : index
    %c0_19 = arith.constant 0 : index
    %c0_20 = arith.constant 0 : index
    %60 = vector.load %arg5[%c0_18, %c0_19, %c0_20] : memref<1x1x128xf32, #tpu.memory_space<vmem>>, vector<1x1x128xf32>
    tpu.vector_store %arg5[%c0_18, %c0_19, %c0_20], %59 {strides = array<i32>} : memref<1x1x128xf32, #tpu.memory_space<vmem>>, vector<1x1x128xf32>,
    return
  }
  func.func @transform_0(%arg0: i32) -> (i32, i32) {
    %c0_i32 = arith.constant 0 : i32
    %c0_i32_0 = arith.constant 0 : i32
    return %arg0, %c0_i32 : i32, i32
  }
  func.func @transform_1(%arg0: i32) -> (i32, i32) {
    %c0_i32 = arith.constant 0 : i32
    %c0_i32_0 = arith.constant 0 : i32
    return %arg0, %c0_i32 : i32, i32
  }
  func.func @transform_2(%arg0: i32) -> (i32, i32) {
    %c0_i32 = arith.constant 0 : i32
    %c0_i32_0 = arith.constant 0 : i32
    %c0_i32_1 = arith.constant 0 : i32
    return %c0_i32, %c0_i32_0 : i32, i32
  }
  func.func @transform_3(%arg0: i32) -> (i32, i32) {
    %c0_i32 = arith.constant 0 : i32
    %c0_i32_0 = arith.constant 0 : i32
    return %arg0, %c0_i32 : i32, i32
  }
  func.func @transform_4(%arg0: i32) -> (i32, i32, i32) {
    %c0_i32 = arith.constant 0 : i32
    %c0_i32_0 = arith.constant 0 : i32
    %c0_i32_1 = arith.constant 0 : i32
    return %arg0, %c0_i32, %c0_i32_0 : i32, i32, i32
  }
}

</mosaic_0001>

<bundles_post_ra>
// kernel: tpu_custom_call.1
= control target key start
LH: loop header
LB: loop body
LE: loop exit
PB: predicated region body
PF: predicated region fallthrough
CT: control target
= control target key end

     0   :  { %10 = vsyncpa [#allocation3], 0  ;;  %v874_v2 = vmov 0   ;;  %s1041_s0 = inlined_call_operand.vmem [shape: s32[16,1], index: 0, kind: input, shape index: {}]   ;;  %s1042_s1 = inlined_call_operand.vmem [shape: s32[16,1], index: 1, kind: input, shape index: {}]   ;;  %s1043_s2 = inlined_call_operand.vmem [shape: f32[32,128], index: 2, kind: input, shape index: {}]   ;;  %s1044_s3 = inlined_call_operand.hbm [shape: f32[16,128], index: 3, kind: output, shape index: {0}]   ;;  %s1045_s4 = inlined_call_operand.hbm [shape: f32[1,1,128], index: 4, kind: output, shape index: {1}]  }
   0x1   :  { %v18_v0 = vld [vmem:[%s1041_s0] sm:$0xff]  ;;  %v19_v1 = vld [vmem:[%s1041_s0 + $0x8] sm:$0xff]  ;;  %820 = vset.pattern.permute.xlu0 %v874_v2  ;;  %v47_v3 = vld [vmem:[%s1043_s2 + $0x18] sm:$0xff]  ;;  %821 = vset.pattern.permute.xlu1 %v874_v2 }
   0x2   :  { %vm24_vm0 = vcmp.gt.s32.totalorder %v18_v0, 0  ;;  %vm26_vm1 = vcmp.gt.s32.totalorder %v19_v1, 0  ;;  %v46_v4 = vld [vmem:[%s1043_s2 + $0x10] sm:$0xff]  ;;  %v45_v5 = vld [vmem:[%s1043_s2 + $0x8] sm:$0xff]  ;;  %v920_v8 = vand.u32 4294901760, %v47_v3  ;;  %v44_v9 = vld [vmem:[%s1043_s2] sm:$0xff] }
   0x3   :  { %v25_v6 = vsel %vm24_vm0, %v18_v0, 0  ;;  %v27_v7 = vsel %vm26_vm1, %v19_v1, 0  ;;  %v925_v10 = vand.u32 4294901760, %v46_v4 }
   0x4   :  { %vm28_vm2 = vcmp.lt.s32.totalorder %v25_v6, 26  ;;  %vm30_vm3 = vcmp.lt.s32.totalorder %v27_v7, 26 }
   0x5   :  { %11 = vsyncpa [#allocation5], 0  ;;  %v29_v11 = vsel %vm28_vm2, %v25_v6, 26  ;;  %v930_v12 = vld [vmem:[%s1042_s1] sm:$0xff]  ;;  %v933_v13 = vsub.f32 %v47_v3, %v920_v8  ;;  %v935_v14 = vand.u32 4294901760, %v45_v5  ;;  %744 = vmatprep.subr.mxu0 %v920_v8  ;;  %v939_v15 = vsub.f32 %v46_v4, %v925_v10 }
   0x6   :  { %33 = vperm.xlu0 %820, %v29_v11   ;;  %v941_v16 = vand.u32 4294901760, %v44_v9  ;;  %745 = vmatpush3.msra.mxu0 %v920_v8  ;;  %v31_v17 = vsel %vm30_vm3, %v27_v7, 26  ;;  %vm591_vm4 = vcmp.gt.s32.totalorder %v930_v12, 0  ;;  %v22_v33 = vlaneseq }
   0x7   :  { %v945_v18 = vand.u32 4294901760, %v933_v13  ;;  %v948_v19 = vsub.f32 %v45_v5, %v935_v14  ;;  %746 = vmatprep.subr.mxu0 %v925_v10  ;;  %v953_v20 = vand.u32 4294901760, %v939_v15  ;;  %v592_v26 = vsel %vm591_vm4, %v930_v12, 0 }
   0x8   :  { %v956_v21 = vsub.f32 %v44_v9, %v941_v16  ;;  %747 = vmatpush3.msra.mxu0 %v925_v10  ;;  %v980_v34 = vand.u32 127, %v22_v33  ;;  %vm48_vm5 = vcmask 261120   ;;  %v875_v36 = vmov 0.0  }
   0x9   :  { %v172_v22 = vsub.f32 %v933_v13, %v945_v18  ;;  %v962_v23 = vand.u32 4294901760, %v948_v19  ;;  %748 = vmatprep.subr.mxu0 %v935_v14  ;;  %v179_v24 = vsub.f32 %v939_v15, %v953_v20  ;;  %vm585_vm12 = vcmp.ge.s32.totalorder %v930_v12, 0 }
   0xa   :  { %36 = vperm.xlu0 %820, %v31_v17   ;;  %v968_v25 = vand.u32 4294901760, %v956_v21  ;;  %749 = vmatpush3.msra.mxu0 %v935_v14  ;;  %vm595_vm8 = vcmp.lt.s32.totalorder %v980_v34, 27  ;;  %vm636_vm14 = vcmask 7168  }
   0xb   :  { %v173_v27 = vand.u32 4294901760, %v172_v22  ;;  %v186_v28 = vsub.f32 %v948_v19, %v962_v23  ;;  %750 = vmatprep.subr.mxu0 %v941_v16  ;;  %v180_v29 = vand.u32 4294901760, %v179_v24 }
   0xc   :  { %v193_v30 = vsub.f32 %v956_v21, %v968_v25  ;;  %751 = vmatpush3.msra.mxu0 %v941_v16 }
   0xd   :  { %755 = vmatprep.subr.mxu1 %v173_v27  ;;  %v187_v31 = vand.u32 4294901760, %v186_v28  ;;  %766 = vmatprep.subr.mxu0 %v933_v13 }
   0xe   :  { %619 = vperm.xlu0 %820, %v592_v26   ;;  %756 = vmatpush3.msra.mxu1 %v173_v27  ;;  %v194_v32 = vand.u32 4294901760, %v193_v30 }
   0xf   :  { %757 = vmatprep.subr.mxu1 %v180_v29 }
  0x10   :  { %758 = vmatpush3.msra.mxu1 %v180_v29 }
  0x11   :  { %759 = vmatprep.subr.mxu1 %v187_v31 }
  0x12   :  { %760 = vmatpush3.msra.mxu1 %v187_v31 }
  0x13   :  { %761 = vmatprep.subr.mxu1 %v194_v32 }
  0x14   :  { %762 = vmatpush3.msra.mxu1 %v194_v32 }
  0x15   :  { %777 = vmatprep.subr.mxu1 %v920_v8 }
  0x81   :  { %v34_v35 = vpop.permute.xlu0 %33 }
  0x82   :  { %vm38_vm6 = vcmp.eq.s32.totalorder %v980_v34, %v34_v35  ;;  %v706_v35 = vsel %vm585_vm12, 1.0, %v875_v36 }
  0x83   :  { %v698_v37 = vsel %vm38_vm6, 1.0, %v875_v36 }
  0x84   :  { %v50_v38 = vsel %vm48_vm5, %v698_v37, 0  ;;  %763 = vmatprep.mubr.msk.f32.mxu1 %vm48_vm5, %v698_v37 }
  0x85   :  { %v125_v39 = vsub.f32 %v50_v38, %v50_v38  ;;  %v37_v40 = vpop.permute.xlu0 %36 }
  0x86   :  { %vm39_vm7 = vcmp.eq.s32.totalorder %v980_v34, %v37_v40 }
  0x87   :  { %v699_v41 = vsel %vm39_vm7, 1.0, %v875_v36  ;;  %v126_v42 = vand.u32 4294901760, %v125_v39 }
  0x88   :  { %v53_v43 = vsel %vm48_vm5, %v699_v41, 0  ;;  %764 = vmatmul.mubr.msk.f32.vlgmr.msra.gmra.mxu1 %vm48_vm5, %v699_v41 }
  0x89   :  { %v135_v44 = vsub.f32 %v53_v43, %v53_v43  ;;  %778 = vmatpush3.msra.mxu1 %v920_v8  ;;  %785 = vmatprep.mubr.f32.mxu1 %v126_v42  ;;  %v127_v45 = vsub.f32 %v125_v39, %v126_v42 }
  0x8a   :  { %779 = vmatprep.subr.mxu1 %v925_v10 }
  0x8b   :  { %780 = vmatpush3.msra.mxu1 %v925_v10  ;;  %v128_v46 = vand.u32 4294901760, %v127_v45  ;;  %v136_v47 = vand.u32 4294901760, %v135_v44  ;;  %v649_v45 = vsel %vm636_vm14, %v706_v35, 0.0 }
  0x8c   :  { %781 = vmatprep.subr.mxu1 %v935_v14 }
  0x8d   :  { %782 = vmatpush3.msra.mxu1 %v935_v14  ;;  %752 = vmatprep.mubr.f32.mxu0 %v128_v46  ;;  %v137_v48 = vsub.f32 %v135_v44, %v136_v47 }
  0x8e   :  { %783 = vmatprep.subr.mxu1 %v941_v16 }
  0x8f   :  { %784 = vmatpush3.msra.mxu1 %v941_v16  ;;  %v138_v49 = vand.u32 4294901760, %v137_v48 }
  0x90   :  { %786 = vmatmul.mubr.f32.vlgmr.msra.gmra.mxu1 %v136_v47  ;;  %799 = vmatprep.subr.mxu1 %v920_v8 }
  0x91   :  { %800 = vmatpush3.msra.mxu1 %v920_v8  ;;  %807 = vmatprep.mubr.msk.f32.mxu1 %vm48_vm5, %v698_v37 }
  0x92   :  { %753 = vmatmul.mubr.f32.vlgmr.msra.gmra.mxu0 %v138_v49  ;;  %801 = vmatprep.subr.mxu1 %v925_v10 }
  0x93   :  { %767 = vmatpush3.msra.mxu0 %v933_v13  ;;  %774 = vmatprep.mubr.f32.mxu0 %v125_v39 }
  0x94   :  { %768 = vmatprep.subr.mxu0 %v939_v15  ;;  %802 = vmatpush3.msra.mxu1 %v925_v10  ;;  %v21_v10 = vld [vmem:[%s1042_s1 + $0x8] sm:$0xff]  ;;  %s876_s1 = smov [#allocation2]  }
  0x95   :  { %769 = vmatpush3.msra.mxu0 %v939_v15  ;;  %803 = vmatprep.subr.mxu1 %v935_v14  ;;  %vm593_vm9 = vcmp.gt.s32.totalorder %v21_v10, 0  ;;  %vm586_vm13 = vcmp.ge.s32.totalorder %v21_v10, 0  ;;  %s673_s29 = sshll.u32 %s876_s1, 4  ;;  %s674_s29 = int_to_ptr.vmem [resolvable:$true] %s673_s29 }
  0x96   :  { %770 = vmatprep.subr.mxu0 %v948_v19  ;;  %804 = vmatpush3.msra.mxu1 %v935_v14  ;;  %v594_v11 = vsel %vm593_vm9, %v21_v10, 0  ;;  %v707_v38 = vsel %vm586_vm13, 1.0, %v875_v36  ;;  %s830_s30 = scalar_lea.vmem %s674_s29, 256  ;;  %p835_p1 = scmp.lt.s32.totalorder %s674_s29, %s674_s29 }
  0x97   :  { %771 = vmatpush3.msra.mxu0 %v948_v19  ;;  %805 = vmatprep.subr.mxu1 %v941_v16  ;;  %v650_v46 = vsel %vm636_vm14, %v707_v38, 0.0  ;;  %p831_p0 = scmp.ne.s32.totalorder %s674_s29, %s830_s30  ;;  %p836_p2 = scmp.lt.s32.totalorder %s830_s30, %s830_s30 }
  0x98   :  { %772 = vmatprep.subr.mxu0 %v956_v21  ;;  %806 = vmatpush3.msra.mxu1 %v941_v16  ;;  %v651_v47 = vadd.f32 %v650_v46, %v649_v45 }
  0x99   :  { %773 = vmatpush3.msra.mxu0 %v956_v21  ;;  %808 = vmatmul.mubr.msk.f32.vlgmr.msra.gmra.mxu1 %vm48_vm5, %v699_v41  ;;  %p837_p3 = por %p836_p2, %p835_p1 }
  0x9a   :  { %775 = vmatmul.mubr.f32.vlgmr.msra.gmra.mxu0 %v135_v44  ;;  %788 = vmatprep.subr.mxu0 %v945_v18 }
  0x9b   :  { %789 = vmatpush3.msra.mxu0 %v945_v18  ;;  %796 = vmatprep.mubr.msk.f32.mxu0 %vm48_vm5, %v698_v37  ;;  %p838_p4 = pnand %p837_p3, %p831_p0 }
  0x9c   :  { %790 = vmatprep.subr.mxu0 %v953_v20 }
  0x9d   :  { %791 = vmatpush3.msra.mxu0 %v953_v20  ;;  %v620_v20 = vpop.permute.xlu0 %619 }
  0x9e   :  { %792 = vmatprep.subr.mxu0 %v962_v23  ;;  %vm624_vm10 = vcmp.eq.s32.totalorder %v980_v34, %v620_v20 }
  0x9f   :  { %793 = vmatpush3.msra.mxu0 %v962_v23 }
  0xa0   :  { %794 = vmatprep.subr.mxu0 %v968_v25 }
  0xa1   :  { %795 = vmatpush3.msra.mxu0 %v968_v25 }
  0xa2   :  { %797 = vmatmul.mubr.msk.f32.vlgmr.msra.gmra.mxu0 %vm48_vm5, %v699_v41 }
 0x148   :  { %v765_v51 = vpop.f32.mrf.mxu1 }
 0x14a   :  { %v231_v53 = vpop.f32.mrf.mxu1 }
 0x150   :  { %v787_v56 = vpop.f32.mrf.mxu1 }
 0x152   :  { %v754_v50 = vpop.f32.mrf.mxu0  ;;  %v401_v61 = vpop.f32.mrf.mxu1 }
 0x153   :  { %v238_v55 = vadd.f32 %v765_v51, %v754_v50 }
 0x154   :  { %v130_v52 = vpop.f32.mrf.mxu0 }
 0x155   :  { %v232_v58 = vadd.f32 %v231_v53, %v130_v52 }
 0x159   :  { %v809_v63 = vpop.f32.mrf.mxu1 }
 0x15a   :  { %v776_v54 = vpop.f32.mrf.mxu0 }
 0x15b   :  { %v325_v59 = vadd.f32 %v776_v54, %v238_v55  ;;  %v573_v6 = vpop.f32.mrf.mxu1 }
 0x15c   :  { %v317_v57 = vpop.f32.mrf.mxu0 }
 0x15d   :  { %v318_v60 = vadd.f32 %v317_v57, %v232_v58  ;;  %v410_v62 = vadd.f32 %v787_v56, %v325_v59 }
 0x15f   :  { %v402_v2 = vadd.f32 %v401_v61, %v318_v60 }
 0x162   :  { %v798_v0 = vpop.f32.mrf.mxu0 }
 0x163   :  { %v499_v1 = vadd.f32 %v798_v0, %v410_v62 }
 0x164   :  { %v492_v3 = vpop.f32.mrf.mxu0 }
 0x165   :  { %v580_v4 = vadd.f32 %v809_v63, %v499_v1  ;;  %v493_v5 = vadd.f32 %v492_v3, %v402_v2 }
 0x167   :  { %584 = vst [vmem:[#allocation2 + $0x8] sm:$0xff] %v580_v4  ;;  %v574_v7 = vadd.f32 %v573_v6, %v493_v5  ;;  %v597_v9 = vsel %vm595_vm8, %v580_v4, -1e+30 }
 0x169   :  { %583 = vst [vmem:[#allocation2] sm:$0xff] %v574_v7  ;;  %v596_v8 = vsel %vm595_vm8, %v574_v7, -1e+30  ;;  %v626_v23 = vsel %vm624_vm10, %v574_v7, 0.0 }
 0x16a   :  { %598 = vmax.xlane.f32.xlu1 %v596_v8 }
 0x16e   :  { %600 = vmax.xlane.f32.xlu1 %v597_v9 }
 0x17f   :  { %622 = vperm.xlu1 %821, %v594_v11  }
 0x1f3   :  { %v599_v13 = vpop.xlane.xlu1 %598 }
 0x1f4   :  { %v602_v14 = vsub.f32 %v596_v8, %v599_v13 }
 0x1f6   :  { %v604_v15 = vmul.f32 1.442695, %v602_v14 }
 0x1f7   :  { %v601_v16 = vpop.xlane.xlu1 %600 }
 0x1f8   :  { %822 = vpow2.f32 %v604_v15  ;;  %v603_v17 = vsub.f32 %v597_v9, %v601_v16 }
 0x1fa   :  { %v606_v18 = vmul.f32 1.442695, %v603_v17 }
 0x1fb   :  { %v623_v21 = vpop.permute.xlu1 %622 }
 0x1fc   :  { %824 = vpow2.f32 %v606_v18  ;;  %vm625_vm11 = vcmp.eq.s32.totalorder %v980_v34, %v623_v21 }
 0x1fd   :  { %v627_v24 = vsel %vm625_vm11, %v580_v4, 0.0 }
 0x205   :  { %v823_v19 = vpop.eup %822 }
 0x206   :  { %608 = vadd.xlane.f32.xlu0 %v823_v19 }
 0x209   :  { %v825_v22 = vpop.eup %824 }
 0x20a   :  { %610 = vadd.xlane.f32.xlu1 %v825_v22  ;;  %628 = vadd.xlane.f32.xlu0 %v626_v23 }
 0x20e   :  { %630 = vadd.xlane.f32.xlu0 %v627_v24 }
 0x28f   :  { %v609_v25 = vpop.xlane.xlu0 %608 }
 0x290   :  { %826 = vlog2.f32 %v609_v25 }
 0x293   :  { %v611_v26 = vpop.xlane.xlu1 %610  ;;  %v629_v29 = vpop.xlane.xlu0 %628 }
 0x294   :  { %828 = vlog2.f32 %v611_v26 }
 0x297   :  { %v631_v39 = vpop.xlane.xlu0 %630 }
 0x29d   :  { %v827_v27 = vpop.eup %826 }
 0x29e   :  { %v613_v28 = vmul.f32 0.6931472, %v827_v27 }
 0x2a0   :  { %v616_v30 = vadd.f32 %v613_v28, %v599_v13 }
 0x2a1   :  { %v829_v31 = vpop.eup %828 }
 0x2a2   :  { %v615_v32 = vmul.f32 0.6931472, %v829_v31  ;;  %v632_v33 = vsub.f32 %v616_v30, %v629_v29 }
 0x2a4   :  { %v617_v37 = vadd.f32 %v615_v32, %v601_v16  ;;  %v634_v40 = vmul.f32 %v706_v35, %v632_v33 }
 0x2a6   :  { %v633_v41 = vsub.f32 %v617_v37, %v631_v39  ;;  %v637_v43 = vsel %vm636_vm14, %v634_v40, 0.0 }
 0x2a8   :  { %v635_v42 = vmul.f32 %v707_v38, %v633_v41 }
 0x2aa   :  { %v638_v44 = vsel %vm636_vm14, %v635_v42, 0.0 }
 0x2ab   :  { %v639_v12 = vadd.f32 %v638_v44, %v637_v43 }
 0x2ad   :  { %640 = vadd.xlane.f32.xlu0 %v639_v12 }
 0x2b1   :  { %652 = vadd.xlane.f32.xlu0 %v651_v47 }
 0x2b2   :  { %841 = shalt.err (!%p838_p4)
}
 0x2b3   :  { %s877_s5 = smov 128   ;;  %s878_s6 = smov 8   ;;  %vm662_vm15 = vcmp.eq.s32.totalorder %v980_v34, 1  ;;  %vm661_vm0 = vcmp.eq.s32.totalorder %v980_v34, 0 }
 0x2b4   :  { %679 = dma.vmem_to_hbm [thread:$0]  %s674_s29, 256, %s1044_s3, [#allocation3], %s877_s5, %s877_s5, %s878_s6  }
 0x2b5   :  { %s879_s3 = smov [#allocation4]  }
 0x2b6   :  { %s686_s10 = sshll.u32 %s879_s3, 4  ;;  %s687_s10 = int_to_ptr.vmem [resolvable:$true] %s686_s10 }
 0x2b7   :  { %s850_s12 = scalar_lea.vmem %s687_s10, 16  ;;  %s854_s13 = scalar_lea.vmem %s687_s10, 32 }
 0x2b8   :  { %p851_p5 = scmp.ne.s32.totalorder %s687_s10, %s850_s12  ;;  %p855_p6 = scmp.lt.s32.totalorder %s687_s10, %s687_s10 }
 0x2b9   :  { %p856_p7 = scmp.lt.s32.totalorder %s854_s13, %s850_s12 }
 0x2bb   :  { %p857_p8 = por %p856_p7, %p855_p6 }
 0x2bd   :  { %p858_p9 = pnand %p857_p8, %p851_p5 }
 0x336   :  { %v641_v36 = vpop.xlane.xlu0 %640 }
 0x337   :  { %v642_v48 = vrot.slane %v641_v36, 4 }
 0x339   :  { %v643_v49 = vadd.f32 %v642_v48, %v641_v36 }
 0x33a   :  { %v653_v50 = vpop.xlane.xlu0 %652 }
 0x33b   :  { %v644_v51 = vrot.slane %v643_v49, 2  ;;  %v654_v52 = vrot.slane %v653_v50, 4 }
 0x33d   :  { %v655_v53 = vadd.f32 %v654_v52, %v653_v50  ;;  %v645_v54 = vadd.f32 %v644_v51, %v643_v49 }
 0x33f   :  { %v656_v55 = vrot.slane %v655_v53, 2  ;;  %v646_v56 = vrot.slane %v645_v54, 1 }
 0x341   :  { %v657_v57 = vadd.f32 %v656_v55, %v655_v53  ;;  %v647_v58 = vadd.f32 %v646_v56, %v645_v54 }
 0x343   :  { %810 = vpush %v647_v58  ;;  %v658_v59 = vrot.slane %v657_v57, 1 }
 0x345   :  { %v659_v60 = vadd.f32 %v658_v59, %v657_v57 }
 0x347   :  { %812 = vpush %v659_v60 }
 0x374   :  { %s811_s9 = spop %810 }
 0x375   :  { %v665_v62 = vstv %s811_s9 }
 0x378   :  { %s813_s11 = spop %812 }
 0x379   :  { %v663_v61 = vstv %s813_s11 }
 0x37a   :  { %v664_v63 = vsel %vm662_vm15, %v663_v61, 0.0 }
 0x37b   :  { %v666_v0 = vsel %vm661_vm0, %v665_v62, %v664_v63 }
 0x37c   :  { %667 = vst [vmem:[#allocation4] sm:$0x1] %v666_v0 }
 0x37d   :  { %861 = shalt.err (!%p858_p9)
}
 0x37e   :  { %689 = dma.vmem_to_hbm [thread:$0]  %s687_s10, 16, %s1045_s4, [#allocation5]  }
 0x37f   :  { %870 = dma.done.wait [#allocation3], 256  }
 0x380   :  { %871 = vsyncadd [#allocation3], 4294967040 }
 0x381   :  { %872 = dma.done.wait [#allocation5], 16  }
 0x382   :  { %873 = vsyncadd [#allocation5], 4294967280 }
 0x383   :  { %696 = vsyncpa [#allocation3], 1 }
 0x384   :  { %697 = vsyncpa [#allocation5], 1 }

</bundles_post_ra>
